<compile_context>
chip_gen: v5e
topology: v5e:2x2
jax: 0.10.0
libtpu: 0.0.40
codegen_flags: <defaults>
</compile_context>

<pallas_src>
import functools

import jax
import jax.numpy as jnp
from jax.experimental import pallas as pl
from jax.experimental.pallas import tpu as pltpu


def _round_up(v, m):
    return -(-v // m) * m


def _vmem_capacity_bytes():
    """Per-TensorCore VMEM capacity; conservative fallback if the query fails."""
    try:
        info = pltpu.get_tpu_info()
        cap = getattr(info, "vmem_capacity_bytes", None)
        if cap:
            return int(cap)
    except Exception:  # non-TPU host / interpret mode / older runtime
        pass
    return 64 << 20  # v7x per-TC VMEM: safe lower bound across v5e/v6e/v7x


def _pick_batch_tile(N, footprint_fn, budget_bytes, min_blocks):
    """Largest divisor b of N whose double-buffered VMEM footprint fits the
    budget while keeping >= min_blocks grid steps (pipelining + megacore).
    Falls back to b=1 (always legal) for prime/awkward N — perf cliff only."""
    best = 1
    for b in range(1, N + 1):
        if N % b:
            continue
        if footprint_fn(b) > budget_bytes:
            continue
        if N // b < min_blocks:
            continue
        best = b
    return best


# ---------------------------------------------------------------------------
# Pass 1: fused channel mean + channel max on the lane-dense (B, C, H*W) block
# ---------------------------------------------------------------------------
def _channel_reduce_kernel(x_ref, avg_ref, max_ref, *, C, inv_C):
    # x_ref:            VMEM (B_TILE, C, HW)   — HW in lanes, C in sublanes.
    # avg_ref/max_ref:  VMEM (B_TILE, 1, HW)   — lane-dense outputs.
    def load(c):
        return x_ref[:, c, :].astype(jnp.float32)

    s = load(0)
    m = s
    if C <= 32:
        # Fully static unroll for small C; only one channel slice live at a time.
        for c in range(1, C):
            xc = load(c)
            s = s + xc
            m = jnp.maximum(m, xc)
    else:
        def body(c, carry):
            s, m = carry
            xc = load(c)
            return s + xc, jnp.maximum(m, xc)
        s, m = jax.lax.fori_loop(1, C, body, (s, m))

    # NOTE: sum * (1/C) matches torch.mean to f32 rounding; for very large C
    # with large-magnitude activations this can differ from a running mean in
    # the last ulps (acceptable here).
    avg_ref[:, 0, :] = s * inv_C
    max_ref[:, 0, :] = m


# ---------------------------------------------------------------------------
# Pass 2: KxK conv (2 -> 1 channels, zero-padded) + sigmoid on the tiny maps
# ---------------------------------------------------------------------------
def _conv_sigmoid_kernel(w_ref, avg_ref, max_ref, o_ref, *, K, H, W):
    # w_ref:            SMEM (2*K*K,) flattened Conv2d weight, ordered (in_ch, kh, kw)
    # avg_ref/max_ref:  VMEM (B2, Hp, Wp) zero-padded mean / max maps
    # o_ref:            VMEM (B2, H, W) attention map
    acc = jnp.zeros(o_ref.shape, jnp.float32)
    for kh in range(K):
        # Load the full-width padded row slab once per kh; shift along lanes
        # for the kw taps instead of 49 separate 2-D window loads per map.
        slab_a = avg_ref[:, kh:kh + H, :]
        slab_m = max_ref[:, kh:kh + H, :]
        for kw in range(K):
            w_a = w_ref[kh * K + kw]              # weight[0, 0, kh, kw]
            w_m = w_ref[K * K + kh * K + kw]      # weight[0, 1, kh, kw]
            acc = acc + (w_a * slab_a[:, :, kw:kw + W]
                         + w_m * slab_m[:, :, kw:kw + W])
    o_ref[...] = jax.nn.sigmoid(acc).astype(o_ref.dtype)


def spatial_attention(x, weight, *, kernel_size=7):
    """x: (N, C, H, W); weight: (1, 2, K, K) from Conv2d(2, 1, K, bias=False)."""
    assert kernel_size in (3, 7), "kernel size must be 3 or 7"
    N, C, H, W = x.shape
    K = kernel_size
    pad = 3 if K == 7 else 1
    Hp, Wp = H + 2 * pad, W + 2 * pad
    HW = H * W
    in_item = jnp.dtype(x.dtype).itemsize
    out_item = jnp.dtype(x.dtype).itemsize

    cap = _vmem_capacity_bytes()
    vmem_limit = max(32 << 20, min(int(cap * 0.75), 100 << 20))
    budget = int(cap * 0.4)

    # ------------------ pass 1: channel mean + max ------------------
    x_flat = x.reshape(N, C, HW)  # free metadata reshape (contiguous array)

    def p1_foot(b):  # (8,128)-tiled, double-buffered footprint of one grid step
        in_block = b * _round_up(C, 8) * _round_up(HW, 128) * in_item
        out_block = b * _round_up(1, 8) * _round_up(HW, 128) * 4
        return 2 * in_block + 2 * 2 * out_block

    B1 = _pick_batch_tile(N, p1_foot, budget, min(N, 4))
    grid1 = (N // B1,)

    red_kernel = functools.partial(_channel_reduce_kernel, C=C, inv_C=1.0 / C)
    cost1 = pl.CostEstimate(
        flops=2 * N * C * HW,
        transcendentals=0,
        bytes_accessed=N * C * HW * in_item + 2 * N * HW * 4)

    avg_flat, max_flat = pl.pallas_call(
        red_kernel,
        out_shape=(jax.ShapeDtypeStruct((N, 1, HW), jnp.float32),
                   jax.ShapeDtypeStruct((N, 1, HW), jnp.float32)),
        grid_spec=pltpu.PrefetchScalarGridSpec(
            num_scalar_prefetch=0,
            grid=grid1,
            in_specs=[pl.BlockSpec((B1, C, HW), lambda n: (n, 0, 0))],
            out_specs=[pl.BlockSpec((B1, 1, HW), lambda n: (n, 0, 0)),
                       pl.BlockSpec((B1, 1, HW), lambda n: (n, 0, 0))]),
        compiler_params=pltpu.CompilerParams(
            dimension_semantics=("parallel",),
            vmem_limit_bytes=vmem_limit),
        cost_estimate=cost1,
    )(x_flat)

    # Zero-pad the tiny 2-map feature in the wrapper (reproduces Conv2d's zero
    # padding); costs ~2/C of one pass over x, removes all in-kernel scratch init.
    pad_cfg = ((0, 0), (pad, pad), (pad, pad))
    avg_pad = jnp.pad(avg_flat.reshape(N, H, W), pad_cfg)
    max_pad = jnp.pad(max_flat.reshape(N, H, W), pad_cfg)

    # ------------------ pass 2: conv + sigmoid ------------------
    w_flat = weight.astype(jnp.float32).reshape(-1)  # (2*K*K,), (in_ch, kh, kw)

    def p2_foot(b):
        pad_block = b * _round_up(Hp, 8) * _round_up(Wp, 128) * 4
        out_block = b * _round_up(H, 8) * _round_up(W, 128) * out_item
        return 2 * 2 * pad_block + 2 * out_block

    B2 = _pick_batch_tile(N, p2_foot, budget, min(N, 2))
    grid2 = (N // B2,)

    conv_kernel = functools.partial(_conv_sigmoid_kernel, K=K, H=H, W=W)
    cost2 = pl.CostEstimate(
        flops=4 * N * HW * K * K,
        transcendentals=N * HW,
        bytes_accessed=2 * N * Hp * Wp * 4 + N * HW * out_item)

    out = pl.pallas_call(
        conv_kernel,
        out_shape=jax.ShapeDtypeStruct((N, H, W), x.dtype),
        grid_spec=pltpu.PrefetchScalarGridSpec(
            num_scalar_prefetch=1,  # conv weights live in SMEM
            grid=grid2,
            in_specs=[pl.BlockSpec((B2, Hp, Wp), lambda n, w: (n, 0, 0)),
                      pl.BlockSpec((B2, Hp, Wp), lambda n, w: (n, 0, 0))],
            out_specs=pl.BlockSpec((B2, H, W), lambda n, w: (n, 0, 0))),
        compiler_params=pltpu.CompilerParams(
            dimension_semantics=("parallel",),
            vmem_limit_bytes=vmem_limit),
        cost_estimate=cost2,
    )(w_flat, avg_pad, max_pad)

    return out.reshape(N, 1, H, W)


def _reference(x, weight, pad):
    # Pure-JAX reference mirroring the PyTorch forward.
    avg = jnp.mean(x, axis=1, keepdims=True)
    mx = jnp.max(x, axis=1, keepdims=True)
    feat = jnp.concatenate([avg, mx], axis=1)
    out = jax.lax.conv_general_dilated(
        feat, weight, window_strides=(1, 1),
        padding=[(pad, pad), (pad, pad)],
        dimension_numbers=("NCHW", "OIHW", "NCHW"))
    return jax.nn.sigmoid(out)


if __name__ == "__main__":
    key = jax.random.PRNGKey(0)
    kx, kw = jax.random.split(key)

    N, C, H, W = 2, 4, 16, 16
    K = 7
    pad = 3
    x = jax.random.normal(kx, (N, C, H, W), dtype=jnp.float32)

    # Deterministic Conv2d(2, 1, 7, bias=False) weight init (Kaiming-uniform-like).
    fan_in = 2 * K * K
    bound = 1.0 / (fan_in ** 0.5)
    weight = jax.random.uniform(
        kw, (1, 2, K, K), minval=-bound, maxval=bound, dtype=jnp.float32)

    out = spatial_attention(x, weight, kernel_size=K)
    out = jax.block_until_ready(out)

    ref = _reference(x, weight, pad)
    assert out.shape == (N, 1, H, W)
    assert jnp.allclose(out, ref, atol=1e-5, rtol=1e-5), float(
        jnp.max(jnp.abs(out - ref)))
    print("KERNEL_OK")
</pallas_src>

<mosaic_0001>
module attributes {stable_mosaic.version = 11 : i64} {
  func.func @_channel_reduce_kernel(%arg0: i32, %arg1: memref<1x4x256xf32, #tpu.memory_space<vmem>>, %arg2: memref<1x1x256xf32, #tpu.memory_space<vmem>>, %arg3: memref<1x1x256xf32, #tpu.memory_space<vmem>>) attributes {dimension_semantics = [#tpu.dimension_semantics<parallel>], iteration_bounds = array<i64: 2>, scalar_prefetch = 0 : i64, scratch_operands = 0 : i64, tpu.core_type = #tpu.core_type<tc>, window_params = [{transform_indices = @transform_0, window_bounds = array<i64: 1, 4, 256>}, {transform_indices = @transform_1, window_bounds = array<i64: 1, 1, 256>}, {transform_indices = @transform_2, window_bounds = array<i64: 1, 1, 256>}]} {
    %c0 = arith.constant 0 : index
    %c0_0 = arith.constant 0 : index
    %c0_1 = arith.constant 0 : index
    %0 = vector.load %arg1[%c0, %c0_0, %c0_1] : memref<1x4x256xf32, #tpu.memory_space<vmem>>, vector<1x1x256xf32>
    %1 = vector.shape_cast %0 : vector<1x1x256xf32> to vector<1x256xf32>
    %c0_2 = arith.constant 0 : index
    %c1 = arith.constant 1 : index
    %c0_3 = arith.constant 0 : index
    %2 = vector.load %arg1[%c0_2, %c1, %c0_3] : memref<1x4x256xf32, #tpu.memory_space<vmem>>, vector<1x1x256xf32>
    %3 = vector.shape_cast %2 : vector<1x1x256xf32> to vector<1x256xf32>
    %4 = arith.addf %1, %3 : vector<1x256xf32>
    %5 = arith.maximumf %1, %3 : vector<1x256xf32>
    %c0_4 = arith.constant 0 : index
    %c2 = arith.constant 2 : index
    %c0_5 = arith.constant 0 : index
    %6 = vector.load %arg1[%c0_4, %c2, %c0_5] : memref<1x4x256xf32, #tpu.memory_space<vmem>>, vector<1x1x256xf32>
    %7 = vector.shape_cast %6 : vector<1x1x256xf32> to vector<1x256xf32>
    %8 = arith.addf %4, %7 : vector<1x256xf32>
    %9 = arith.maximumf %5, %7 : vector<1x256xf32>
    %c0_6 = arith.constant 0 : index
    %c3 = arith.constant 3 : index
    %c0_7 = arith.constant 0 : index
    %10 = vector.load %arg1[%c0_6, %c3, %c0_7] : memref<1x4x256xf32, #tpu.memory_space<vmem>>, vector<1x1x256xf32>
    %11 = vector.shape_cast %10 : vector<1x1x256xf32> to vector<1x256xf32>
    %12 = arith.addf %8, %11 : vector<1x256xf32>
    %13 = arith.maximumf %9, %11 : vector<1x256xf32>
    %cst = arith.constant 2.500000e-01 : f32
    %14 = vector.broadcast %cst : f32 to vector<1x256xf32>
    %15 = arith.mulf %12, %14 : vector<1x256xf32>
    %c0_8 = arith.constant 0 : index
    %c0_9 = arith.constant 0 : index
    %c0_10 = arith.constant 0 : index
    %16 = vector.load %arg2[%c0_8, %c0_9, %c0_10] : memref<1x1x256xf32, #tpu.memory_space<vmem>>, vector<1x1x256xf32>
    %17 = vector.shape_cast %16 : vector<1x1x256xf32> to vector<1x256xf32>
    %18 = vector.shape_cast %15 : vector<1x256xf32> to vector<1x1x256xf32>
    tpu.vector_store %arg2[%c0_8, %c0_9, %c0_10], %18 {strides = array<i32>} : memref<1x1x256xf32, #tpu.memory_space<vmem>>, vector<1x1x256xf32>,
    %c0_11 = arith.constant 0 : index
    %c0_12 = arith.constant 0 : index
    %c0_13 = arith.constant 0 : index
    %19 = vector.load %arg3[%c0_11, %c0_12, %c0_13] : memref<1x1x256xf32, #tpu.memory_space<vmem>>, vector<1x1x256xf32>
    %20 = vector.shape_cast %19 : vector<1x1x256xf32> to vector<1x256xf32>
    %21 = vector.shape_cast %13 : vector<1x256xf32> to vector<1x1x256xf32>
    tpu.vector_store %arg3[%c0_11, %c0_12, %c0_13], %21 {strides = array<i32>} : memref<1x1x256xf32, #tpu.memory_space<vmem>>, vector<1x1x256xf32>,
    return
  }
  func.func @transform_0(%arg0: i32) -> (i32, i32, i32) {
    %c0_i32 = arith.constant 0 : i32
    %c0_i32_0 = arith.constant 0 : i32
    %c0_i32_1 = arith.constant 0 : i32
    return %arg0, %c0_i32, %c0_i32_0 : i32, i32, i32
  }
  func.func @transform_1(%arg0: i32) -> (i32, i32, i32) {
    %c0_i32 = arith.constant 0 : i32
    %c0_i32_0 = arith.constant 0 : i32
    %c0_i32_1 = arith.constant 0 : i32
    return %arg0, %c0_i32, %c0_i32_0 : i32, i32, i32
  }
  func.func @transform_2(%arg0: i32) -> (i32, i32, i32) {
    %c0_i32 = arith.constant 0 : i32
    %c0_i32_0 = arith.constant 0 : i32
    %c0_i32_1 = arith.constant 0 : i32
    return %arg0, %c0_i32, %c0_i32_0 : i32, i32, i32
  }
}

</mosaic_0001>

<bundles_post_ra>
// kernel: tpu_custom_call.1
= control target key start
LH: loop header
LB: loop body
LE: loop exit
PB: predicated region body
PF: predicated region fallthrough
CT: control target
= control target key end

     0   :  { %8 = vsyncpa [#allocation3], 0  ;;  %s704_s0 = inlined_call_operand.hbm [shape: f32[2,4,256], index: 0, kind: input, shape index: {}]   ;;  %s705_s1 = inlined_call_operand.hbm [shape: f32[2,1,256], index: 1, kind: output, shape index: {0}]   ;;  %s706_s2 = inlined_call_operand.hbm [shape: f32[2,1,256], index: 2, kind: output, shape index: {1}]  }
   0x1   :  { %10 = vsyncpa [#allocation3 + $0x1], 0 }
   0x2   :  { %11 = vsyncpa [#allocation4], 0 }
   0x3   :  { %13 = vsyncpa [#allocation4 + $0x1], 0 }
   0x4   :  { %14 = vsyncpa [#allocation7], 0 }
   0x5   :  { %16 = vsyncpa [#allocation7 + $0x1], 0  ;;  %s547_s9 = smov 0   ;;  %s549_s10 = smov 0  }
   0x6   :  { %s551_s11 = smov 0   ;;  %s553_s12 = smov 0  }
   0x7 LB: > { %s568_s13 = sadd.s32 4294967295, %s530_s12   ;;  %s331_s14 = sadd.s32 4294967294, %s530_s12   ;;  %s530_s12 = sphi %s553_s12, %s718_s12   ;;  %s526_s11 = sphi %s551_s11, %s717_s11   ;;  %s522_s10 = sphi %s549_s10, %s716_s10   ;;  %s518_s9 = sphi %s547_s9, %s715_s9  }
   0x8   : > { %s572_s15 = sadd.s32 1, %s530_s12   ;;  %s29_s16 = sadd.s32 1, %s526_s11 }
   0x9   : > { %s26_s17 = ssub.s32 %s530_s12, %s572_s15  ;;  %p36_p0 = scmp.ne.s32.totalorder %s526_s11, %s522_s10 }
   0xa   : > { %p27_p1 = scmp.eq.s32.totalorder %s26_s17, 0  ;;  %p37_p2 = scmp.eq.s32.totalorder %s530_s12, 0 }
   0xb   : > { %p42_p3 = scmp.ne.s32.totalorder %s522_s10, %s518_s9  ;;  %p43_p4 = scmp.eq.s32.totalorder %s568_s13, 0 }
   0xc   : > { %s584_s18 = scalar_select %p27_p1, %s526_s11, %s29_s16  }
   0xd   : > { %p586_p5 = por %p37_p2, %p36_p0  ;;  %p590_p6 = por %p43_p4, %p42_p3 }
   0xe   : > { %p66_p7 = scmp.eq.s32.totalorder %s568_s13, 1  ;;  %p72_p8 = scmp.eq.s32.totalorder %s331_s14, 1 }
   0xf   : > { %p368_p10 = scmp.lt.s32.totalorder %s530_s12, 2  ;;  %s118_s23 = sand.u32 1, %s526_s11  }
  0x10   : > { %p597_p11 = por %p66_p7, %p36_p0  ;;  %p601_p12 = por %p72_p8, %p42_p3 }
  0x11   : > { %s350_s24 = sshll.u32 %s530_s12, 3  ;;  %s334_s25 = sshll.u32 %s118_s23, 3 }
  0x12   : > { %s127_s28 = scalar_lea.hbm %s704_s0, %s350_s24  ;;  %s122_s30 = scalar_lea.vmem [#allocation2], %s334_s25 }
  0x13   : > { %s129_s29 = sshll.u32 %s127_s28, 4  ;;  %s131_s3 = sshll.u32 %s122_s30, 4  ;;  %s130_s29 = int_to_ptr.hbm [resolvable:$true] %s129_s29  ;;  %s132_s3 = int_to_ptr.vmem [resolvable:$true] %s131_s3 }
  0x14   : > { %p612_p13 = pnand %p368_p10, %p586_p5  ;;  %p337_p0 = scmp.ge.s32.totalorder %s530_s12, 1 }
  0x15   : > { %p136_p1 = scmp.lt.s32.totalorder %s530_s12, 3  ;;  %s119_s5 = scalar_lea.sflag [#allocation3], %s118_s23 }
  0x16   : > { %s402_s6 = sshra.s32 %s130_s29, 4  ;;  %p406_p3 = pneg %p612_p13  ;;  %s403_s6 = int_to_ptr.hbm [resolvable:$true] %s402_s6 }
  0x17   : > { %s404_s7 = scalar_lea.hbm %s403_s6, 8  ;;  %s409_s16 = scalar_lea.hbm %s704_s0, 16 }
  0x18   : > { %p405_p2 = scmp.ne.s32.totalorder %s403_s6, %s404_s7  ;;  %p410_p5 = scmp.lt.s32.totalorder %s403_s6, %s704_s0 }
  0x19   : > { %p411_p8 = scmp.lt.s32.totalorder %s409_s16, %s404_s7 }
  0x1a   : > { %p407_p4 = pnand %p406_p3, %p405_p2 }
  0x1b   : > { %p412_p10 = por %p411_p8, %p410_p5 }
  0x1c   : > { %p408_p7 = pneg %p407_p4 }
  0x1e   : > { %p413_p9 = pnand %p412_p10, %p408_p7 }
  0x20   : > { %416 = shalt.err (!%p413_p9)
}
  0x21   : > { %360 = dma.hbm_to_vmem [thread:$0]  (!%p612_p13), %s130_s29, 128, %s132_s3, %s119_s5  }
  0x22   : > { %p137_p2 = pnand %p337_p0, %p136_p1 }
  0x23   : > { %s633_s23 = sand.u32 (!%p137_p2), 1, %s522_s10  }
  0x24   : > { %140 = sbr.rel (%p137_p2) target bundleno = 71 (0x47), region = 24  ;;  %s338_s24 = sshll.u32 (!%p137_p2), %s633_s23, 3 }
  0x25   : > { %s143_s25 = scalar_lea.sflag (!%p137_p2), [#allocation3], %s633_s23  ;;  %s146_s26 = scalar_lea.vmem (!%p137_p2), [#allocation2], %s338_s24 }
  0x29   : > { %505 = dma.done.wait (%p590_p6), %s143_s25, 128  }
  0x2a   : > { %507 = vsyncadd (%p590_p6), %s143_s25, 4294967168  ;;  %s339_s27 = sshll.u32 %s633_s23, 1  ;;  %s346_s28 = sshll.u32 %s568_s13, 1  ;;  %v173_v0 = vld [vmem:[%s146_s26] ss:$4 sm:$0x3]  ;;  %v187_v2 = vlaneseq }
  0x2b   : > { %s223_s3 = scalar_lea.hbm %s706_s2, %s346_s28  ;;  %v341_v1 = vld [vmem:[%s146_s26 + $0x1] ss:$4 sm:$0x3]  ;;  %v342_v4 = vld [vmem:[%s146_s26 + $0x2] ss:$4 sm:$0x3]  ;;  %s209_s20 = scalar_lea.hbm %s705_s1, %s346_s28 }
  0x2c   : > { %v176_v3 = vadd.f32 %v341_v1, %v173_v0  ;;  %v177_v5 = vmax.f32 %v173_v0, %v341_v1  ;;  %s172_s4 = scalar_lea.vmem [#allocation6], %s339_s27  ;;  %v343_v6 = vld [vmem:[%s146_s26 + $0x3] ss:$4 sm:$0x3]  ;;  %s227_s8 = sshll.u32 %s223_s3, 4  ;;  %vm649_vm0 = vcmp.lt.s32.totalorder %v187_v2, 256  ;;  %s228_s8 = int_to_ptr.hbm [resolvable:$true] %s227_s8 }
  0x2d   : > { %s225_s5 = sshll.u32 %s172_s4, 4  ;;  %s165_s13 = scalar_lea.vmem [#allocation5], %s339_s27  ;;  %s226_s5 = int_to_ptr.vmem [resolvable:$true] %s225_s5 }
  0x2e   : > { %v180_v7 = vadd.f32 %v342_v4, %v176_v3  ;;  %s211_s14 = sshll.u32 %s165_s13, 4  ;;  %v181_v8 = vmax.f32 %v177_v5, %v342_v4  ;;  %s213_s16 = sshll.u32 %s209_s20, 4  ;;  %s653_s14 = int_to_ptr.vmem [resolvable:$true] %s211_s14  ;;  %s657_s16 = int_to_ptr.hbm [resolvable:$true] %s213_s16 }
  0x2f   : > { %s199_s17 = scalar_lea.sflag [#allocation7], %s633_s23  ;;  %s446_s19 = sshra.s32 %s228_s8, 4  ;;  %s447_s19 = int_to_ptr.hbm [resolvable:$true] %s446_s19 }
  0x30   : > { %v184_v10 = vadd.f32 %v343_v6, %v180_v7  ;;  %v185_v11 = vmax.f32 %v181_v8, %v343_v6  ;;  %s448_s24 = scalar_lea.hbm %s447_s19, 2  ;;  %s452_s27 = scalar_lea.hbm %s706_s2, 4 }
  0x31   : > { %p449_p6 = scmp.ne.s32.totalorder %s447_s19, %s448_s24  ;;  %p453_p0 = scmp.lt.s32.totalorder %s447_s19, %s706_s2 }
  0x32   : > { %v186_v12 = vmul.f32 0.25, %v184_v10  ;;  %192 = vst.msk [vmem:[%s172_s4] sm:$0x3] %vm649_vm0, %v185_v11  ;;  %p454_p1 = scmp.lt.s32.totalorder %s452_s27, %s448_s24 }
  0x33   : > { %p450_p9 = pnand %p449_p6, %p597_p11 }
  0x34   : > { %p455_p3 = por %p454_p1, %p453_p0 }
  0x35   : > { %p451_p13 = pneg %p450_p9 }
  0x37   : > { %p456_p4 = pnand %p455_p3, %p451_p13 }
  0x39   : > { %459 = shalt.err (!%p456_p4)
}
  0x3a   : > { %354 = dma.vmem_to_hbm [thread:$0]  (%p597_p11), %s226_s5, 32, %s228_s8, %s199_s17   ;;  %191 = vst.msk [vmem:[%s165_s13] sm:$0x3] %vm649_vm0, %v186_v12 }
  0x3b   : > { %s194_s30 = scalar_lea.sflag [#allocation4], %s633_s23  ;;  %s474_s3 = sshra.s32 %s657_s16, 4  ;;  %s475_s3 = int_to_ptr.hbm [resolvable:$true] %s474_s3 }
  0x3c   : > { %s476_s4 = scalar_lea.hbm %s475_s3, 2  ;;  %s480_s20 = scalar_lea.hbm %s705_s1, 4 }
  0x3d   : > { %p477_p7 = scmp.ne.s32.totalorder %s475_s3, %s476_s4  ;;  %p481_p10 = scmp.lt.s32.totalorder %s475_s3, %s705_s1 }
  0x3e   : > { %p482_p2 = scmp.lt.s32.totalorder %s480_s20, %s476_s4 }
  0x3f   : > { %p478_p5 = pnand %p477_p7, %p597_p11 }
  0x40   : > { %p483_p6 = por %p482_p2, %p481_p10 }
  0x41   : > { %p479_p8 = pneg %p478_p5 }
  0x43   : > { %p484_p9 = pnand %p483_p6, %p479_p8 }
  0x45   : > { %487 = shalt.err (!%p484_p9)
}
  0x46   : > { %353 = dma.vmem_to_hbm [thread:$0]  (%p597_p11), %s653_s14, 32, %s657_s16, %s194_s30  }
  0x47 PF: > { %s239_s23 = sand.u32 1, %s518_s9   ;;  %p714_p13 = scmp.ge.s32.totalorder %s530_s12, 2 }
  0x48   : > { %s240_s5 = scalar_lea.sflag [#allocation4], %s239_s23 }
  0x49   : > { %p362_p0 = pnand %p714_p13, %p601_p12 }
  0x4b   : > { %p363_p1 = pneg %p362_p0 }
  0x4d   : > { %509 = dma.done.wait (%p363_p1), %s240_s5, 32  }
  0x4e   : > { %511 = vsyncadd (%p363_p1), %s240_s5, 4294967264  ;;  %s250_s8 = scalar_lea.sflag [#allocation7], %s239_s23 }
  0x4f   : > { %513 = dma.done.wait (%p363_p1), %s250_s8, 32  }
  0x50   : > { %515 = vsyncadd (%p363_p1), %s250_s8, 4294967264  ;;  %p19_p11 = scmp.ge.s32.totalorder %s572_s15, 4   ;;  %s715_s9 = smov %s522_s10 }
  0x51   : > { %s716_s10 = smov %s526_s11  ;;  %s717_s11 = smov %s584_s18 }
  0x52   : > { %s718_s12 = smov %s572_s15  ;;  %21 = sbr.rel (!%p19_p11) target bundleno = 7 (0x7), region = 89 }
  0x57   :  { %256 = vsyncpa [#allocation3], 1 }
  0x58   :  { %258 = vsyncpa [#allocation3 + $0x1], 1 }
  0x59   :  { %259 = vsyncpa [#allocation4], 1 }
  0x5a   :  { %261 = vsyncpa [#allocation4 + $0x1], 1 }
  0x5b   :  { %262 = vsyncpa [#allocation7], 1 }
  0x5c   :  { %264 = vsyncpa [#allocation7 + $0x1], 1 }

</bundles_post_ra>
